<compile_context>
chip_gen: v6e
topology: v6e:2x2x1
jax: 0.10.0
libtpu: 0.0.40
codegen_flags: <defaults>
</compile_context>

<pallas_src>
import functools

import jax
import jax.numpy as jnp
from jax import lax
from jax.experimental import pallas as pl
from jax.experimental.pallas import tpu as pltpu


def _simmax_kernel(xi_ref, xj_ref, o_ref):
    """Compute one (tm x tn) tile of -log(clamp(cos_sim))."""
    xi = xi_ref[...].astype(jnp.float32)   # [tm, C_pad]
    xj = xj_ref[...].astype(jnp.float32)   # [tn, C_pad]

    # F.normalize(x, dim=1): x / max(||x||, 1e-12)  ==  x * rsqrt(max(||x||^2, 1e-24)).
    # rsqrt lands on the EUP (its own VLIW slot) instead of VPU sqrt + divide.
    xi_n = xi * lax.rsqrt(jnp.maximum(jnp.sum(xi * xi, axis=1, keepdims=True), 1e-24))
    xj_n = xj * lax.rsqrt(jnp.maximum(jnp.sum(xj * xj, axis=1, keepdims=True), 1e-24))

    # Cosine-similarity tile on the MXU: contract the feature dim of both operands
    # directly — no explicit transpose / XLU passes.
    sim = lax.dot_general(
        xi_n, xj_n,
        dimension_numbers=(((1,), (1,)), ((), ())),
        preferred_element_type=jnp.float32,
    )

    sim = jnp.clip(sim, 0.0005, 0.9995)
    o_ref[...] = -jnp.log(sim)


@functools.partial(jax.jit, static_argnames=())
def sim_max_loss(x):
    """x: [N, C] float array.  Returns the [N, N] float32 loss matrix -log(cos_sim)."""
    n, c = x.shape

    # Tile choice: MXU/lane aligned.  128 tiles for small problems, 256 for large
    # (matches the 256-wide MXU on v6e/v7x; still 128-multiple for v5e).
    tile = 128 if n <= 128 else 256
    n_pad = pl.cdiv(n, tile) * tile
    c_pad = pl.cdiv(c, 128) * 128

    # Zero-pad rows/features.  Zero rows have ||x||^2 = 0 -> rsqrt(1e-24) * 0 = 0,
    # so padded entries just hit the clamp floor and are sliced off below.
    xp = jnp.zeros((n_pad, c_pad), jnp.float32).at[:n, :c].set(x.astype(jnp.float32))

    grid = (n_pad // tile, n_pad // tile)
    # TODO(synk): for very large C, add a trailing K grid axis with a VMEM f32
    # accumulator; at these sizes the full feature dim fits in one block.
    out = pl.pallas_call(
        _simmax_kernel,
        out_shape=jax.ShapeDtypeStruct((n_pad, n_pad), jnp.float32),
        grid=grid,
        in_specs=[
            pl.BlockSpec((tile, c_pad), lambda i, j: (i, 0)),   # row tile i of x
            pl.BlockSpec((tile, c_pad), lambda i, j: (j, 0)),   # row tile j of x
        ],
        out_specs=pl.BlockSpec((tile, tile), lambda i, j: (i, j)),
        compiler_params=pltpu.CompilerParams(
            dimension_semantics=("parallel", "parallel"),
        ),
    )(xp, xp)
    return out[:n, :n]


def _reference(x):
    x = x.astype(jnp.float32)
    norm = jnp.sqrt(jnp.sum(x * x, axis=1, keepdims=True))
    xn = x / jnp.maximum(norm, 1e-12)
    sim = xn @ xn.T
    sim = jnp.clip(sim, 0.0005, 0.9995)
    return -jnp.log(sim)


if __name__ == "__main__":
    key = jax.random.PRNGKey(0)
    # SimMaxLoss.forward takes embedded_bg of shape [N, C].
    N, C = 8, 32
    x = jax.random.normal(key, (N, C), dtype=jnp.float32)

    out = sim_max_loss(x)
    out = jax.block_until_ready(out)

    ref = _reference(x)
    assert out.shape == (N, N)
    assert jnp.allclose(out, ref, atol=1e-5, rtol=1e-5), (
        f"max abs diff = {jnp.max(jnp.abs(out - ref))}"
    )
    print("KERNEL_OK")
</pallas_src>

<mosaic_0001>
module attributes {stable_mosaic.version = 11 : i64} {
  func.func @_simmax_kernel(%arg0: i32, %arg1: i32, %arg2: memref<128x128xf32, #tpu.memory_space<vmem>>, %arg3: memref<128x128xf32, #tpu.memory_space<vmem>>, %arg4: memref<128x128xf32, #tpu.memory_space<vmem>>) attributes {dimension_semantics = [#tpu.dimension_semantics<parallel>, #tpu.dimension_semantics<parallel>], iteration_bounds = array<i64: 1, 1>, scalar_prefetch = 0 : i64, scratch_operands = 0 : i64, tpu.core_type = #tpu.core_type<tc>, window_params = [{transform_indices = @transform_0, window_bounds = array<i64: 128, 128>}, {transform_indices = @transform_1, window_bounds = array<i64: 128, 128>}, {transform_indices = @transform_2, window_bounds = array<i64: 128, 128>}]} {
    %c0 = arith.constant 0 : index
    %c0_0 = arith.constant 0 : index
    %0 = vector.load %arg2[%c0, %c0_0] : memref<128x128xf32, #tpu.memory_space<vmem>>, vector<128x128xf32>
    %c0_1 = arith.constant 0 : index
    %c0_2 = arith.constant 0 : index
    %1 = vector.load %arg3[%c0_1, %c0_2] : memref<128x128xf32, #tpu.memory_space<vmem>>, vector<128x128xf32>
    %2 = arith.mulf %0, %0 : vector<128x128xf32>
    %cst = arith.constant dense<0.000000e+00> : vector<128xf32>
    %3 = vector.multi_reduction <add>, %2, %cst [1] : vector<128x128xf32> to vector<128xf32>
    %4 = vector.shape_cast %3 : vector<128xf32> to vector<128x1xf32>
    %cst_3 = arith.constant 1.000000e-24 : f32
    %5 = vector.broadcast %cst_3 : f32 to vector<128x1xf32>
    %6 = arith.maximumf %4, %5 : vector<128x1xf32>
    %7 = math.rsqrt %6 : vector<128x1xf32>
    %8 = vector.broadcast %7 : vector<128x1xf32> to vector<128x128xf32>
    %9 = arith.mulf %0, %8 : vector<128x128xf32>
    %10 = arith.mulf %1, %1 : vector<128x128xf32>
    %cst_4 = arith.constant dense<0.000000e+00> : vector<128xf32>
    %11 = vector.multi_reduction <add>, %10, %cst_4 [1] : vector<128x128xf32> to vector<128xf32>
    %12 = vector.shape_cast %11 : vector<128xf32> to vector<128x1xf32>
    %cst_5 = arith.constant 1.000000e-24 : f32
    %13 = vector.broadcast %cst_5 : f32 to vector<128x1xf32>
    %14 = arith.maximumf %12, %13 : vector<128x1xf32>
    %15 = math.rsqrt %14 : vector<128x1xf32>
    %16 = vector.broadcast %15 : vector<128x1xf32> to vector<128x128xf32>
    %17 = arith.mulf %1, %16 : vector<128x128xf32>
    %cst_6 = arith.constant dense<0.000000e+00> : vector<128x128xf32>
    %18 = tpu.matmul %9, %17, %cst_6 {dimension_numbers = #tpu.dot_dimension_numbers<[1], [1], [0], [0], [0, 0, 1, 0], [], []>} : vector<128x128xf32>, vector<128x128xf32>, vector<128x128xf32> -> vector<128x128xf32>
    %cst_7 = arith.constant 5.000000e-04 : f32
    %cst_8 = arith.constant 0.999499976 : f32
    %19 = vector.broadcast %cst_7 : f32 to vector<128x128xf32>
    %20 = arith.maximumf %19, %18 : vector<128x128xf32>
    %21 = vector.broadcast %cst_8 : f32 to vector<128x128xf32>
    %22 = arith.minimumf %21, %20 : vector<128x128xf32>
    %23 = math.log %22 : vector<128x128xf32>
    %cst_9 = arith.constant 0.000000e+00 : f32
    %24 = vector.broadcast %cst_9 : f32 to vector<128x128xf32>
    %25 = arith.subf %24, %23 : vector<128x128xf32>
    %c0_10 = arith.constant 0 : index
    %c0_11 = arith.constant 0 : index
    %26 = vector.load %arg4[%c0_10, %c0_11] : memref<128x128xf32, #tpu.memory_space<vmem>>, vector<128x128xf32>
    tpu.vector_store %arg4[%c0_10, %c0_11], %25 {strides = array<i32>} : memref<128x128xf32, #tpu.memory_space<vmem>>, vector<128x128xf32>,
    return
  }
  func.func @transform_0(%arg0: i32, %arg1: i32) -> (i32, i32) {
    %c0_i32 = arith.constant 0 : i32
    %c0_i32_0 = arith.constant 0 : i32
    return %arg0, %c0_i32 : i32, i32
  }
  func.func @transform_1(%arg0: i32, %arg1: i32) -> (i32, i32) {
    %c0_i32 = arith.constant 0 : i32
    %c0_i32_0 = arith.constant 0 : i32
    return %arg1, %c0_i32 : i32, i32
  }
  func.func @transform_2(%arg0: i32, %arg1: i32) -> (i32, i32) {
    %c0_i32 = arith.constant 0 : i32
    return %arg0, %arg1 : i32, i32
  }
}

</mosaic_0001>

<bundles_post_ra>
// kernel: sim_max_loss.1
= control target key start
LH: loop header
LB: loop body
LE: loop exit
PB: predicated region body
PF: predicated region fallthrough
CT: control target
= control target key end

     0   :  { %s1042_s1 = inlined_call_operand.vmem [shape: f32[128,128], index: 1, kind: input, shape index: {}, may-alias: {0,1}]   ;;  %s1043_s0 = inlined_call_operand.vmem [shape: f32[128,128], index: 0, kind: input, shape index: {}, may-alias: {0,1}]   ;;  %s1044_s2 = inlined_call_operand.vmem [shape: f32[128,128], index: 2, kind: output, shape index: {}]  }
   0x1   :  { %v714_v0 = vld [vmem:[%s1042_s1 + $0x78] sm:$0xff]  ;;  %v719_v1 = vld [vmem:[%s1042_s1 + $0x70] sm:$0xff]  ;;  %v724_v2 = vld [vmem:[%s1042_s1 + $0x68] sm:$0xff] }
   0x2   :  { %v154_v3 = vmul.f32 %v714_v0, %v714_v0  ;;  %v152_v4 = vmul.f32 %v724_v2, %v724_v2  ;;  %v733_v5 = vld [vmem:[%s1042_s1 + $0x60] sm:$0xff]  ;;  %v153_v6 = vmul.f32 %v719_v1, %v719_v1  ;;  %v742_v8 = vld [vmem:[%s1042_s1 + $0x58] sm:$0xff]  ;;  %v747_v9 = vld [vmem:[%s1042_s1 + $0x50] sm:$0xff] }
   0x3   :  { %v151_v7 = vmul.f32 %v733_v5, %v733_v5  ;;  %v150_v10 = vmul.f32 %v742_v8, %v742_v8  ;;  %v149_v11 = vmul.f32 %v747_v9, %v747_v9  ;;  %v756_v12 = vld [vmem:[%s1042_s1 + $0x48] sm:$0xff]  ;;  %v761_v13 = vld [vmem:[%s1042_s1 + $0x40] sm:$0xff]  ;;  %v770_v16 = vld [vmem:[%s1042_s1 + $0x38] sm:$0xff] }
   0x4   :  { %185 = vadd.xlane.f32.xlu0 %v154_v3  ;;  %181 = vadd.xlane.f32.xlu1 %v152_v4  ;;  %v148_v14 = vmul.f32 %v756_v12, %v756_v12  ;;  %v147_v15 = vmul.f32 %v761_v13, %v761_v13  ;;  %v775_v17 = vld [vmem:[%s1042_s1 + $0x30] sm:$0xff]  ;;  %v146_v18 = vmul.f32 %v770_v16, %v770_v16  ;;  %v784_v20 = vld [vmem:[%s1042_s1 + $0x28] sm:$0xff]  ;;  %v789_v21 = vld [vmem:[%s1042_s1 + $0x20] sm:$0xff] }
   0x5   :  { %v145_v19 = vmul.f32 %v775_v17, %v775_v17  ;;  %v144_v22 = vmul.f32 %v784_v20, %v784_v20  ;;  %v143_v23 = vmul.f32 %v789_v21, %v789_v21  ;;  %v798_v24 = vld [vmem:[%s1042_s1 + $0x18] sm:$0xff]  ;;  %v803_v25 = vld [vmem:[%s1042_s1 + $0x10] sm:$0xff]  ;;  %v812_v28 = vld [vmem:[%s1042_s1 + $0x8] sm:$0xff] }
   0x6   :  { %v142_v26 = vmul.f32 %v798_v24, %v798_v24  ;;  %v141_v27 = vmul.f32 %v803_v25, %v803_v25  ;;  %v817_v29 = vld [vmem:[%s1042_s1] sm:$0xff]  ;;  %v140_v30 = vmul.f32 %v812_v28, %v812_v28  ;;  %v840_v36 = vld [vmem:[%s1043_s0 + $0x48] sm:$0xff]  ;;  %v854_v40 = vld [vmem:[%s1043_s0 + $0x50] sm:$0xff] }
   0x7   :  { %v139_v31 = vmul.f32 %v817_v29, %v817_v29  ;;  %v826_v32 = vld [vmem:[%s1043_s0 + $0x40] sm:$0xff]  ;;  %v845_v37 = vld [vmem:[%s1043_s0 + $0x8] sm:$0xff]  ;;  %v52_v38 = vmul.f32 %v840_v36, %v840_v36  ;;  %v859_v41 = vld [vmem:[%s1043_s0 + $0x10] sm:$0xff]  ;;  %v53_v42 = vmul.f32 %v854_v40, %v854_v40 }
   0x8   :  { %183 = vadd.xlane.f32.xlu0 %v153_v6  ;;  %179 = vadd.xlane.f32.xlu1 %v151_v7  ;;  %v831_v33 = vld [vmem:[%s1043_s0] sm:$0xff]  ;;  %v51_v34 = vmul.f32 %v826_v32, %v826_v32  ;;  %v44_v39 = vmul.f32 %v845_v37, %v845_v37  ;;  %v45_v43 = vmul.f32 %v859_v41, %v859_v41  ;;  %v868_v44 = vld [vmem:[%s1043_s0 + $0x58] sm:$0xff]  ;;  %v896_v52 = vld [vmem:[%s1043_s0 + $0x68] sm:$0xff] }
   0x9   :  { %v43_v35 = vmul.f32 %v831_v33, %v831_v33  ;;  %v873_v45 = vld [vmem:[%s1043_s0 + $0x18] sm:$0xff]  ;;  %v54_v46 = vmul.f32 %v868_v44, %v868_v44  ;;  %v882_v48 = vld [vmem:[%s1043_s0 + $0x60] sm:$0xff]  ;;  %v901_v53 = vld [vmem:[%s1043_s0 + $0x28] sm:$0xff]  ;;  %v56_v54 = vmul.f32 %v896_v52, %v896_v52 }
   0xa   :  { %v46_v47 = vmul.f32 %v873_v45, %v873_v45  ;;  %v887_v49 = vld [vmem:[%s1043_s0 + $0x20] sm:$0xff]  ;;  %v55_v50 = vmul.f32 %v882_v48, %v882_v48  ;;  %v48_v55 = vmul.f32 %v901_v53, %v901_v53  ;;  %v910_v56 = vld [vmem:[%s1043_s0 + $0x70] sm:$0xff]  ;;  %v924_v60 = vld [vmem:[%s1043_s0 + $0x78] sm:$0xff] }
   0xb   :  { %v47_v51 = vmul.f32 %v887_v49, %v887_v49  ;;  %v915_v57 = vld [vmem:[%s1043_s0 + $0x30] sm:$0xff]  ;;  %v57_v58 = vmul.f32 %v910_v56, %v910_v56  ;;  %v929_v61 = vld [vmem:[%s1043_s0 + $0x38] sm:$0xff]  ;;  %v58_v62 = vmul.f32 %v924_v60, %v924_v60 }
   0xc   :  { %177 = vadd.xlane.f32.xlu0 %v150_v10  ;;  %175 = vadd.xlane.f32.xlu1 %v149_v11  ;;  %v49_v59 = vmul.f32 %v915_v57, %v915_v57  ;;  %v50_v63 = vmul.f32 %v929_v61, %v929_v61 }
  0x10   :  { %173 = vadd.xlane.f32.xlu0 %v148_v14  ;;  %171 = vadd.xlane.f32.xlu1 %v147_v15 }
  0x14   :  { %169 = vadd.xlane.f32.xlu0 %v146_v18  ;;  %167 = vadd.xlane.f32.xlu1 %v145_v19 }
  0x18   :  { %165 = vadd.xlane.f32.xlu0 %v144_v22  ;;  %163 = vadd.xlane.f32.xlu1 %v143_v23 }
  0x1c   :  { %161 = vadd.xlane.f32.xlu0 %v142_v26  ;;  %159 = vadd.xlane.f32.xlu1 %v141_v27 }
  0x20   :  { %157 = vadd.xlane.f32.xlu0 %v140_v30  ;;  %155 = vadd.xlane.f32.xlu1 %v139_v31 }
  0x24   :  { %75 = vadd.xlane.f32.xlu1 %v51_v34  ;;  %59 = vadd.xlane.f32.xlu0 %v43_v35 }
  0x28   :  { %77 = vadd.xlane.f32.xlu1 %v52_v38  ;;  %61 = vadd.xlane.f32.xlu0 %v44_v39 }
  0x2c   :  { %79 = vadd.xlane.f32.xlu1 %v53_v42  ;;  %63 = vadd.xlane.f32.xlu0 %v45_v43 }
  0x30   :  { %81 = vadd.xlane.f32.xlu1 %v54_v46  ;;  %65 = vadd.xlane.f32.xlu0 %v46_v47 }
  0x34   :  { %83 = vadd.xlane.f32.xlu1 %v55_v50  ;;  %67 = vadd.xlane.f32.xlu0 %v47_v51 }
  0x38   :  { %85 = vadd.xlane.f32.xlu1 %v56_v54  ;;  %69 = vadd.xlane.f32.xlu0 %v48_v55 }
  0x3c   :  { %87 = vadd.xlane.f32.xlu1 %v57_v58  ;;  %71 = vadd.xlane.f32.xlu0 %v49_v59 }
  0x40   :  { %89 = vadd.xlane.f32.xlu1 %v58_v62  ;;  %73 = vadd.xlane.f32.xlu0 %v50_v63 }
  0x8d   :  { %v186_v3 = vpop.xlane.xlu0 %185  ;;  %v182_v4 = vpop.xlane.xlu1 %181 }
  0x8e   :  { %v202_v6 = vmax.f32 %v186_v3, 1e-24  ;;  %v200_v7 = vmax.f32 %v182_v4, 1e-24 }
  0x90   :  { %600 = vrsqrt.f32 %v202_v6 }
  0x91   :  { %v184_v10 = vpop.xlane.xlu0 %183  ;;  %v180_v11 = vpop.xlane.xlu1 %179  ;;  %602 = vrsqrt.f32 %v200_v7 }
  0x92   :  { %v201_v14 = vmax.f32 %v184_v10, 1e-24  ;;  %v199_v15 = vmax.f32 %v180_v11, 1e-24 }
  0x94   :  { %604 = vrsqrt.f32 %v201_v14 }
  0x95   :  { %v178_v18 = vpop.xlane.xlu0 %177  ;;  %v176_v19 = vpop.xlane.xlu1 %175  ;;  %606 = vrsqrt.f32 %v199_v15 }
  0x96   :  { %v198_v22 = vmax.f32 %v178_v18, 1e-24  ;;  %v197_v27 = vmax.f32 %v176_v19, 1e-24 }
  0x98   :  { %608 = vrsqrt.f32 %v198_v22 }
  0x99   :  { %v174_v23 = vpop.xlane.xlu0 %173  ;;  %v172_v26 = vpop.xlane.xlu1 %171  ;;  %610 = vrsqrt.f32 %v197_v27 }
  0x9a   :  { %v196_v38 = vmax.f32 %v174_v23, 1e-24  ;;  %v195_v51 = vmax.f32 %v172_v26, 1e-24 }
  0x9c   :  { %612 = vrsqrt.f32 %v196_v38 }
  0x9d   :  { %v601_v30 = vpop.eup %600  ;;  %v170_v31 = vpop.xlane.xlu0 %169  ;;  %614 = vrsqrt.f32 %v195_v51 }
  0x9e   :  { %v168_v34 = vpop.xlane.xlu1 %167  ;;  %v234_v35 = vmul.f32 %v601_v30, %v714_v0  ;;  %v603_v39 = vpop.eup %602  ;;  %v194_v59 = vmax.f32 %v170_v31, 1e-24 }
  0x9f   :  { %v232_v50 = vmul.f32 %v603_v39, %v724_v2  ;;  %v193_v4 = vmax.f32 %v168_v34, 1e-24 }
  0xa0   :  { %512 = vmatprep.subr.mxu0 %v234_v35  ;;  %568 = vmatprep.subr.mxu1 %v234_v35  ;;  %616 = vrsqrt.f32 %v194_v59 }
  0xa1   :  { %v605_v42 = vpop.eup %604  ;;  %513 = vmatpush3.xpose.msra.mxu0 %v234_v35  ;;  %584 = vmatpush3.xpose.msra.mxu1 %v234_v35  ;;  %v166_v43 = vpop.xlane.xlu0 %165  ;;  %618 = vrsqrt.f32 %v193_v4 }
  0xa2   :  { %v164_v46 = vpop.xlane.xlu1 %163  ;;  %v233_v47 = vmul.f32 %v605_v42, %v719_v1  ;;  %v607_v54 = vpop.eup %606  ;;  %v192_v15 = vmax.f32 %v166_v43, 1e-24 }
  0xa3   :  { %v231_v58 = vmul.f32 %v607_v54, %v733_v5 }
  0xa4   :  { %514 = vmatprep.subr.mxu0 %v233_v47  ;;  %569 = vmatprep.subr.mxu1 %v233_v47 }
  0xa5   :  { %515 = vmatpush3.xpose.msra.mxu0 %v233_v47  ;;  %585 = vmatpush3.xpose.msra.mxu1 %v233_v47  ;;  %v162_v0 = vpop.xlane.xlu0 %161  ;;  %v609_v62 = vpop.eup %608 }
  0xa6   :  { %v938_v55 = vpop.xlane.xlu1 %159  ;;  %516 = vmatprep.subr.mxu0 %v232_v50  ;;  %570 = vmatprep.subr.mxu1 %v232_v50  ;;  %v230_v63 = vmul.f32 %v609_v62, %v742_v8  ;;  %v611_v3 = vpop.eup %610  ;;  %v190_v31 = vmax.f32 %v162_v0, 1e-24 }
  0xa7   :  { %v229_v5 = vmul.f32 %v611_v3, %v747_v9  ;;  %v191_v9 = vmax.f32 %v164_v46, 1e-24  ;;  %v189_v39 = vmax.f32 %v938_v55, 1e-24 }
  0xa9   :  { %517 = vmatpush3.xpose.msra.mxu0 %v232_v50  ;;  %586 = vmatpush3.xpose.msra.mxu1 %v232_v50  ;;  %v941_v1 = vpop.xlane.xlu0 %157  ;;  %v613_v14 = vpop.eup %612 }
  0xaa   :  { %v943_v2 = vpop.xlane.xlu1 %155  ;;  %518 = vmatprep.subr.mxu0 %v231_v58  ;;  %571 = vmatprep.subr.mxu1 %v231_v58  ;;  %v228_v19 = vmul.f32 %v613_v14, %v756_v12  ;;  %v615_v22 = vpop.eup %614  ;;  %v188_v51 = vmax.f32 %v941_v1, 1e-24 }
  0xab   :  { %v227_v27 = vmul.f32 %v615_v22, %v761_v13  ;;  %v187_v0 = vmax.f32 %v943_v2, 1e-24 }
  0xad   :  { %519 = vmatpush3.xpose.msra.mxu0 %v231_v58  ;;  %587 = vmatpush3.xpose.msra.mxu1 %v231_v58  ;;  %v60_v7 = vpop.xlane.xlu0 %59  ;;  %v617_v30 = vpop.eup %616 }
  0xae   :  { %v76_v6 = vpop.xlane.xlu1 %75  ;;  %520 = vmatprep.subr.mxu0 %v230_v63  ;;  %572 = vmatprep.subr.mxu1 %v230_v63  ;;  %v91_v11 = vmax.f32 %v60_v7, 1e-24  ;;  %v226_v35 = vmul.f32 %v617_v30, %v770_v16  ;;  %v619_v38 = vpop.eup %618 }
  0xaf   :  { %v99_v10 = vmax.f32 %v76_v6, 1e-24  ;;  %v225_v16 = vmul.f32 %v619_v38, %v775_v17 }
  0xb1   :  { %620 = vrsqrt.f32 %v99_v10  ;;  %521 = vmatpush3.xpose.msra.mxu0 %v230_v63  ;;  %588 = vmatpush3.xpose.msra.mxu1 %v230_v63  ;;  %v949_v18 = vpop.xlane.xlu0 %61 }
  0xb2   :  { %622 = vrsqrt.f32 %v91_v11  ;;  %v947_v8 = vpop.xlane.xlu1 %77  ;;  %522 = vmatprep.subr.mxu0 %v229_v5  ;;  %573 = vmatprep.subr.mxu1 %v229_v5  ;;  %v92_v59 = vmax.f32 %v949_v18, 1e-24 }
  0xb3   :  { %624 = vrsqrt.f32 %v192_v15  ;;  %v100_v17 = vmax.f32 %v947_v8, 1e-24 }
  0xb4   :  { %626 = vrsqrt.f32 %v191_v9 }
  0xb5   :  { %523 = vmatpush3.xpose.msra.mxu0 %v229_v5  ;;  %589 = vmatpush3.xpose.msra.mxu1 %v229_v5  ;;  %v954_v26 = vpop.xlane.xlu0 %63  ;;  %628 = vrsqrt.f32 %v190_v31 }
  0xb6   :  { %v952_v23 = vpop.xlane.xlu1 %79  ;;  %524 = vmatprep.subr.mxu0 %v228_v19  ;;  %574 = vmatprep.subr.mxu1 %v228_v19  ;;  %630 = vrsqrt.f32 %v189_v39 }
  0xb7   :  { %632 = vrsqrt.f32 %v188_v51  ;;  %v101_v63 = vmax.f32 %v952_v23, 1e-24 }
  0xb8   :  { %634 = vrsqrt.f32 %v187_v0 }
  0xb9   :  { %525 = vmatpush3.xpose.msra.mxu0 %v228_v19  ;;  %590 = vmatpush3.xpose.msra.mxu1 %v228_v19  ;;  %v959_v12 = vpop.xlane.xlu0 %65  ;;  %636 = vrsqrt.f32 %v100_v17 }
  0xba   :  { %v957_v34 = vpop.xlane.xlu1 %81  ;;  %526 = vmatprep.subr.mxu0 %v227_v27  ;;  %575 = vmatprep.subr.mxu1 %v227_v27  ;;  %638 = vrsqrt.f32 %v92_v59  ;;  %v94_v6 = vmax.f32 %v959_v12, 1e-24 }
  0xbb   :  { %v102_v3 = vmax.f32 %v957_v34, 1e-24  ;;  %640 = vrsqrt.f32 %v101_v63 }
  0xbd   :  { %527 = vmatpush3.xpose.msra.mxu0 %v227_v27  ;;  %591 = vmatpush3.xpose.msra.mxu1 %v227_v27  ;;  %v68_v47 = vpop.xlane.xlu0 %67 }
  0xbe   :  { %v621_v42 = vpop.eup %620  ;;  %528 = vmatprep.subr.mxu0 %v226_v35  ;;  %576 = vmatprep.subr.mxu1 %v226_v35  ;;  %v84_v43 = vpop.xlane.xlu1 %83  ;;  %v95_v10 = vmax.f32 %v68_v47, 1e-24 }
  0xbf   :  { %v623_v13 = vpop.eup %622  ;;  %v131_v46 = vmul.f32 %v621_v42, %v826_v32  ;;  %v103_v5 = vmax.f32 %v84_v43, 1e-24 }
  0xc0   :  { %v123_v50 = vmul.f32 %v623_v13, %v831_v33  ;;  %v625_v54 = vpop.eup %624 }
  0xc1   :  { %556 = vmatprep.mubr.f32.mxu1 %v131_v46  ;;  %529 = vmatpush3.xpose.msra.mxu0 %v226_v35  ;;  %v224_v32 = vmul.f32 %v625_v54, %v784_v20  ;;  %v627_v58 = vpop.eup %626  ;;  %v70_v33 = vpop.xlane.xlu0 %69  ;;  %v93_v20 = vmax.f32 %v954_v26, 1e-24 }
  0xc2   :  { %592 = vmatpush3.xpose.msra.mxu1 %v226_v35  ;;  %530 = vmatprep.subr.mxu0 %v225_v16  ;;  %v86_v55 = vpop.xlane.xlu1 %85  ;;  %v223_v62 = vmul.f32 %v627_v58, %v789_v21  ;;  %v629_v1 = vpop.eup %628  ;;  %v96_v22 = vmax.f32 %v70_v33, 1e-24 }
  0xc3   :  { %577 = vmatprep.subr.mxu1 %v225_v16  ;;  %544 = vmatprep.mubr.f32.mxu0 %v123_v50  ;;  %v222_v7 = vmul.f32 %v629_v1, %v798_v24  ;;  %v631_v21 = vpop.eup %630  ;;  %642 = vrsqrt.f32 %v93_v20  ;;  %v104_v11 = vmax.f32 %v86_v55, 1e-24 }
  0xc4   :  { %644 = vrsqrt.f32 %v102_v3  ;;  %v221_v14 = vmul.f32 %v631_v21, %v803_v25  ;;  %v633_v18 = vpop.eup %632 }
  0xc5   :  { %531 = vmatpush3.xpose.msra.mxu0 %v225_v16  ;;  %v72_v4 = vpop.xlane.xlu0 %71  ;;  %646 = vrsqrt.f32 %v94_v6  ;;  %v220_v23 = vmul.f32 %v633_v18, %v812_v28  ;;  %v635_v27 = vpop.eup %634 }
  0xc6   :  { %593 = vmatpush3.xpose.msra.mxu1 %v225_v16  ;;  %532 = vmatprep.subr.mxu0 %v224_v32  ;;  %v88_v2 = vpop.xlane.xlu1 %87  ;;  %648 = vrsqrt.f32 %v103_v5  ;;  %v97_v24 = vmax.f32 %v72_v4, 1e-24  ;;  %v637_v25 = vpop.eup %636  ;;  %v219_v30 = vmul.f32 %v635_v27, %v817_v29 }
  0xc7   :  { %578 = vmatprep.subr.mxu1 %v224_v32  ;;  %v105_v15 = vmax.f32 %v88_v2, 1e-24  ;;  %650 = vrsqrt.f32 %v95_v10  ;;  %v639_v31 = vpop.eup %638  ;;  %v132_v42 = vmul.f32 %v637_v25, %v840_v36 }
  0xc8   :  { %652 = vrsqrt.f32 %v104_v11  ;;  %v641_v34 = vpop.eup %640  ;;  %v124_v39 = vmul.f32 %v639_v31, %v845_v37 }
  0xc9   :  { %533 = vmatpush3.xpose.msra.mxu0 %v224_v32  ;;  %v74_v19 = vpop.xlane.xlu0 %73  ;;  %654 = vrsqrt.f32 %v105_v15  ;;  %v133_v29 = vmul.f32 %v641_v34, %v854_v40 }
  0xca   :  { %594 = vmatpush3.xpose.msra.mxu1 %v224_v32  ;;  %534 = vmatprep.subr.mxu0 %v223_v62  ;;  %v90_v8 = vpop.xlane.xlu1 %89  ;;  %v98_v26 = vmax.f32 %v74_v19, 1e-24  ;;  %656 = vrsqrt.f32 %v97_v24 }
  0xcb   :  { %579 = vmatprep.subr.mxu1 %v223_v62  ;;  %v106_v9 = vmax.f32 %v90_v8, 1e-24  ;;  %658 = vrsqrt.f32 %v96_v22 }
  0xcd   :  { %535 = vmatpush3.xpose.msra.mxu0 %v223_v62  ;;  %660 = vrsqrt.f32 %v106_v9 }
  0xce   :  { %595 = vmatpush3.xpose.msra.mxu1 %v223_v62  ;;  %536 = vmatprep.subr.mxu0 %v222_v7  ;;  %662 = vrsqrt.f32 %v98_v26 }
  0xcf   :  { %580 = vmatprep.subr.mxu1 %v222_v7 }
  0xd0   :  { %v643_v28 = vpop.eup %642 }
  0xd1   :  { %537 = vmatpush3.xpose.msra.mxu0 %v222_v7  ;;  %v645_v12 = vpop.eup %644  ;;  %v125_v43 = vmul.f32 %v643_v28, %v859_v41 }
  0xd2   :  { %596 = vmatpush3.xpose.msra.mxu1 %v222_v7  ;;  %538 = vmatprep.subr.mxu0 %v221_v14  ;;  %v647_v35 = vpop.eup %646  ;;  %v134_v16 = vmul.f32 %v645_v12, %v868_v44 }
  0xd3   :  { %581 = vmatprep.subr.mxu1 %v221_v14  ;;  %v649_v38 = vpop.eup %648  ;;  %v126_v51 = vmul.f32 %v647_v35, %v873_v45 }
  0xd4   :  { %v651_v13 = vpop.eup %650  ;;  %v135_v36 = vmul.f32 %v649_v38, %v882_v48 }
  0xd5   :  { %539 = vmatpush3.xpose.msra.mxu0 %v221_v14  ;;  %v653_v46 = vpop.eup %652  ;;  %v127_v37 = vmul.f32 %v651_v13, %v887_v49 }
  0xd6   :  { %597 = vmatpush3.xpose.msra.mxu1 %v221_v14  ;;  %540 = vmatprep.subr.mxu0 %v220_v23  ;;  %v655_v47 = vpop.eup %654  ;;  %v136_v45 = vmul.f32 %v653_v46, %v896_v52 }
  0xd7   :  { %582 = vmatprep.subr.mxu1 %v220_v23  ;;  %v657_v50 = vpop.eup %656  ;;  %v137_v32 = vmul.f32 %v655_v47, %v910_v56 }
  0xd8   :  { %v659_v54 = vpop.eup %658  ;;  %v129_v41 = vmul.f32 %v657_v50, %v915_v57 }
  0xd9   :  { %541 = vmatpush3.xpose.msra.mxu0 %v220_v23  ;;  %v128_v55 = vmul.f32 %v659_v54, %v901_v53 }
  0xda   :  { %598 = vmatpush3.xpose.msra.mxu1 %v220_v23  ;;  %542 = vmatprep.subr.mxu0 %v219_v30  ;;  %v661_v0 = vpop.eup %660 }
  0xdb   :  { %583 = vmatprep.subr.mxu1 %v219_v30  ;;  %v663_v40 = vpop.eup %662  ;;  %v138_v48 = vmul.f32 %v661_v0, %v924_v60 }
  0xdc   :  { %v130_v44 = vmul.f32 %v663_v40, %v929_v61 }
  0xdd   :  { %543 = vmatpush3.xpose.msra.mxu0 %v219_v30 }
  0xde   :  { %599 = vmatpush3.xpose.msra.mxu1 %v219_v30 }
  0xe0   :  { %545 = vmatmul.mubr.f32.vlgmr.msra.gmra.mxu0 %v124_v39 }
  0xe1   :  { %557 = vmatmul.mubr.f32.vlgmr.msra.gmra.mxu1 %v132_v42  ;;  %547 = vmatprep.mubr.f32.mxu0 %v125_v43 }
  0xe2   :  { %559 = vmatprep.mubr.f32.mxu1 %v133_v29 }
  0xe4   :  { %548 = vmatmul.mubr.f32.gmra.mxu0 %v126_v51 }
  0xe5   :  { %560 = vmatmul.mubr.f32.gmra.mxu1 %v134_v16  ;;  %550 = vmatprep.mubr.f32.mxu0 %v127_v37 }
  0xe6   :  { %562 = vmatprep.mubr.f32.mxu1 %v135_v36 }
  0xe8   :  { %551 = vmatmul.mubr.f32.gmra.mxu0 %v128_v55 }
  0xe9   :  { %563 = vmatmul.mubr.f32.gmra.mxu1 %v136_v45  ;;  %553 = vmatprep.mubr.f32.mxu0 %v129_v41 }
  0xea   :  { %565 = vmatprep.mubr.f32.mxu1 %v137_v32 }
  0xec   :  { %554 = vmatmul.mubr.f32.gmra.mxu0 %v130_v44 }
  0xed   :  { %566 = vmatmul.mubr.f32.gmra.mxu1 %v138_v48 }
 0x1a0   :  { %v546_v49 = vpop.f32.mrf.mxu0 }
 0x1a1   :  { %v558_v58 = vpop.f32.mrf.mxu1  ;;  %v381_v33 = vmax.f32 %v546_v49, 0.0005 }
 0x1a2   :  { %v389_v57 = vmax.f32 %v558_v58, 0.0005  ;;  %v301_v17 = vpop.f32.mrf.mxu0 }
 0x1a3   :  { %v341_v56 = vpop.f32.mrf.mxu1  ;;  %v397_v59 = vmin.f32 %v381_v33, 0.9995  ;;  %v380_v62 = vmax.f32 %v301_v17, 0.0005 }
 0x1a4   :  { %v405_v53 = vmin.f32 %v389_v57, 0.9995  ;;  %v388_v52 = vmax.f32 %v341_v56, 0.0005  ;;  %v549_v1 = vpop.f32.mrf.mxu0 }
 0x1a5   :  { %v561_v63 = vpop.f32.mrf.mxu1  ;;  %664 = vlog2.f32 %v397_v59  ;;  %v396_v61 = vmin.f32 %v380_v62, 0.9995  ;;  %v383_v20 = vmax.f32 %v549_v1, 0.0005 }
 0x1a6   :  { %v391_v60 = vmax.f32 %v561_v63, 0.0005  ;;  %666 = vlog2.f32 %v405_v53  ;;  %v404_v2 = vmin.f32 %v388_v52, 0.9995  ;;  %v311_v3 = vpop.f32.mrf.mxu0 }
 0x1a7   :  { %v351_v4 = vpop.f32.mrf.mxu1  ;;  %668 = vlog2.f32 %v396_v61  ;;  %v399_v6 = vmin.f32 %v383_v20, 0.9995  ;;  %v382_v21 = vmax.f32 %v311_v3, 0.0005 }
 0x1a8   :  { %v407_v7 = vmin.f32 %v391_v60, 0.9995  ;;  %670 = vlog2.f32 %v404_v2  ;;  %v390_v5 = vmax.f32 %v351_v4, 0.0005  ;;  %v552_v10 = vpop.f32.mrf.mxu0 }
 0x1a9   :  { %v564_v11 = vpop.f32.mrf.mxu1  ;;  %672 = vlog2.f32 %v399_v6  ;;  %v398_v14 = vmin.f32 %v382_v21, 0.9995  ;;  %v385_v15 = vmax.f32 %v552_v10, 0.0005 }
 0x1aa   :  { %v393_v8 = vmax.f32 %v564_v11, 0.0005  ;;  %674 = vlog2.f32 %v407_v7  ;;  %v406_v18 = vmin.f32 %v390_v5, 0.9995  ;;  %v321_v24 = vpop.f32.mrf.mxu0 }
 0x1ab   :  { %v361_v19 = vpop.f32.mrf.mxu1  ;;  %676 = vlog2.f32 %v398_v14  ;;  %v401_v22 = vmin.f32 %v385_v15, 0.9995  ;;  %v384_v23 = vmax.f32 %v321_v24, 0.0005 }
 0x1ac   :  { %v409_v9 = vmin.f32 %v393_v8, 0.9995  ;;  %678 = vlog2.f32 %v406_v18  ;;  %v392_v26 = vmax.f32 %v361_v19, 0.0005  ;;  %v555_v27 = vpop.f32.mrf.mxu0 }
 0x1ad   :  { %v567_v25 = vpop.f32.mrf.mxu1  ;;  %680 = vlog2.f32 %v401_v22  ;;  %v400_v30 = vmin.f32 %v384_v23, 0.9995  ;;  %v387_v31 = vmax.f32 %v555_v27, 0.0005 }
 0x1ae   :  { %v395_v34 = vmax.f32 %v567_v25, 0.0005  ;;  %682 = vlog2.f32 %v409_v9  ;;  %v408_v28 = vmin.f32 %v392_v26, 0.9995  ;;  %v331_v12 = vpop.f32.mrf.mxu0 }
 0x1af   :  { %v371_v35 = vpop.f32.mrf.mxu1  ;;  %684 = vlog2.f32 %v400_v30  ;;  %v403_v38 = vmin.f32 %v387_v31, 0.9995  ;;  %v386_v42 = vmax.f32 %v331_v12, 0.0005 }
 0x1b0   :  { %v411_v39 = vmin.f32 %v395_v34, 0.9995  ;;  %686 = vlog2.f32 %v408_v28  ;;  %v394_v13 = vmax.f32 %v371_v35, 0.0005 }
 0x1b1   :  { %688 = vlog2.f32 %v403_v38  ;;  %v402_v43 = vmin.f32 %v386_v42, 0.9995 }
 0x1b2   :  { %v665_v29 = vpop.eup %664  ;;  %690 = vlog2.f32 %v411_v39  ;;  %v410_v46 = vmin.f32 %v394_v13, 0.9995 }
 0x1b3   :  { %v667_v47 = vpop.eup %666  ;;  %v415_v50 = vmul.f32 0.6931472, %v665_v29  ;;  %692 = vlog2.f32 %v402_v43 }
 0x1b4   :  { %v669_v51 = vpop.eup %668  ;;  %v431_v16 = vmul.f32 0.6931472, %v667_v47  ;;  %694 = vlog2.f32 %v410_v46 }
 0x1b5   :  { %v671_v54 = vpop.eup %670  ;;  %v445_v37 = vsub.f32 0.0, %v415_v50  ;;  %v413_v36 = vmul.f32 0.6931472, %v669_v51 }
 0x1b6   :  { %v673_v0 = vpop.eup %672  ;;  %v453_v40 = vsub.f32 0.0, %v431_v16  ;;  %v429_v41 = vmul.f32 0.6931472, %v671_v54 }
 0x1b7   :  { %v675_v32 = vpop.eup %674  ;;  %461 = vst [vmem:[%s1044_s2 + $0x8] sm:$0xff] %v445_v37  ;;  %v444_v55 = vsub.f32 0.0, %v413_v36  ;;  %v419_v45 = vmul.f32 0.6931472, %v673_v0 }
 0x1b8   :  { %v677_v44 = vpop.eup %676  ;;  %469 = vst [vmem:[%s1044_s2 + $0x48] sm:$0xff] %v453_v40  ;;  %v452_v48 = vsub.f32 0.0, %v429_v41  ;;  %v435_v49 = vmul.f32 0.6931472, %v675_v32 }
 0x1b9   :  { %v679_v58 = vpop.eup %678  ;;  %460 = vst [vmem:[%s1044_s2] sm:$0xff] %v444_v55  ;;  %v447_v33 = vsub.f32 0.0, %v419_v45  ;;  %v417_v57 = vmul.f32 0.6931472, %v677_v44 }
 0x1ba   :  { %v681_v17 = vpop.eup %680  ;;  %468 = vst [vmem:[%s1044_s2 + $0x40] sm:$0xff] %v452_v48  ;;  %v455_v56 = vsub.f32 0.0, %v435_v49  ;;  %v433_v59 = vmul.f32 0.6931472, %v679_v58 }
 0x1bb   :  { %v683_v53 = vpop.eup %682  ;;  %463 = vst [vmem:[%s1044_s2 + $0x18] sm:$0xff] %v447_v33  ;;  %v446_v62 = vsub.f32 0.0, %v417_v57  ;;  %v423_v52 = vmul.f32 0.6931472, %v681_v17 }
 0x1bc   :  { %v685_v1 = vpop.eup %684  ;;  %471 = vst [vmem:[%s1044_s2 + $0x58] sm:$0xff] %v455_v56  ;;  %v454_v63 = vsub.f32 0.0, %v433_v59  ;;  %v439_v61 = vmul.f32 0.6931472, %v683_v53 }
 0x1bd   :  { %v687_v20 = vpop.eup %686  ;;  %462 = vst [vmem:[%s1044_s2 + $0x10] sm:$0xff] %v446_v62  ;;  %v449_v60 = vsub.f32 0.0, %v423_v52  ;;  %v421_v2 = vmul.f32 0.6931472, %v685_v1 }
 0x1be   :  { %v689_v3 = vpop.eup %688  ;;  %470 = vst [vmem:[%s1044_s2 + $0x50] sm:$0xff] %v454_v63  ;;  %v457_v4 = vsub.f32 0.0, %v439_v61  ;;  %v437_v6 = vmul.f32 0.6931472, %v687_v20 }
 0x1bf   :  { %v691_v7 = vpop.eup %690  ;;  %465 = vst [vmem:[%s1044_s2 + $0x28] sm:$0xff] %v449_v60  ;;  %v448_v21 = vsub.f32 0.0, %v421_v2  ;;  %v427_v5 = vmul.f32 0.6931472, %v689_v3 }
 0x1c0   :  { %v693_v10 = vpop.eup %692  ;;  %473 = vst [vmem:[%s1044_s2 + $0x68] sm:$0xff] %v457_v4  ;;  %v456_v11 = vsub.f32 0.0, %v437_v6  ;;  %v443_v14 = vmul.f32 0.6931472, %v691_v7 }
 0x1c1   :  { %v695_v15 = vpop.eup %694  ;;  %464 = vst [vmem:[%s1044_s2 + $0x20] sm:$0xff] %v448_v21  ;;  %v451_v8 = vsub.f32 0.0, %v427_v5  ;;  %v425_v18 = vmul.f32 0.6931472, %v693_v10 }
 0x1c2   :  { %472 = vst [vmem:[%s1044_s2 + $0x60] sm:$0xff] %v456_v11  ;;  %v459_v24 = vsub.f32 0.0, %v443_v14  ;;  %v441_v19 = vmul.f32 0.6931472, %v695_v15 }
 0x1c3   :  { %467 = vst [vmem:[%s1044_s2 + $0x38] sm:$0xff] %v451_v8  ;;  %v450_v22 = vsub.f32 0.0, %v425_v18 }
 0x1c4   :  { %475 = vst [vmem:[%s1044_s2 + $0x78] sm:$0xff] %v459_v24  ;;  %v458_v9 = vsub.f32 0.0, %v441_v19 }
 0x1c5   :  { %466 = vst [vmem:[%s1044_s2 + $0x30] sm:$0xff] %v450_v22 }
 0x1c6   :  { %474 = vst [vmem:[%s1044_s2 + $0x70] sm:$0xff] %v458_v9 }

</bundles_post_ra>
